<compile_context>
chip_gen: v6e
topology: v6e:2x2x1
jax: 0.10.0
libtpu: 0.0.40
codegen_flags: <defaults>
</compile_context>

<pallas_src>
import math

import jax
import jax.numpy as jnp
from jax import lax
from jax.experimental import pallas as pl
from jax.experimental.pallas import tpu as pltpu


def _round_up(x, m):
    return ((x + m - 1) // m) * m


def _vmem_capacity_bytes():
    try:
        return int(pltpu.get_tpu_info().vmem_capacity_bytes)
    except Exception:
        return 64 * (1 << 20)  # conservative fallback (v7x per-TC VMEM)


def _num_tensorcores():
    """Best-effort TensorCore count (2 on v7x, 1 on v5e/v6e)."""
    try:
        info = pltpu.get_tpu_info()
        for attr in ("num_cores", "core_count", "num_tensorcores", "tensorcore_count"):
            v = getattr(info, attr, None)
            if v:
                return max(1, int(v))
    except Exception:
        pass
    try:
        return max(1, int(getattr(jax.local_devices()[0], "num_cores", 1)))
    except Exception:
        return 1


def _pick_tm_max(tk, out_dim, r, x_itemsize, w_itemsize, out_itemsize, budget):
    """Largest row tile whose double-buffered blocks + temporaries fit budget."""
    for tm in (2048, 1024, 512, 256, 128, 64, 32, 16, 8):
        need = 2 * tm * tk * x_itemsize                 # double-buffered x tile
        need += 2 * tm * out_dim * out_itemsize         # double-buffered out tile
        need += 2 * r * (tk + out_dim) * w_itemsize     # weight blocks (dbl-buffered)
        need += tm * (out_dim + r) * 4                  # f32 matmul temps + h_acc
        if need <= budget:
            return tm
    return 8


def _lora_kernel(x_ref, wd_ref, wu_t_ref, o_ref, h_acc):
    # x_ref:    (tm, tk)       input tile (native dtype; cast in-kernel if needed)
    # wd_ref:   (r, tk)        lora_down weight slice (lane-dense layout)
    # wu_t_ref: (r, out_dim)   lora_up weight, pre-transposed & pre-scaled by gain
    # o_ref:    (tm, out_dim)  output tile (written on last k step)
    # h_acc:    (tm, r) f32    scratch accumulator across the K axis
    k = pl.program_id(1)

    @pl.when(k == 0)
    def _():
        h_acc[...] = jnp.zeros_like(h_acc)

    x = x_ref[...]
    if x.dtype != wd_ref.dtype:
        x = x.astype(wd_ref.dtype)  # in-kernel cast: hidden under the DMA
    # h += x @ Wd.T  (contract the in_dim axis of both; no lane-padded transpose)
    h_acc[...] += lax.dot_general(
        x, wd_ref[...],
        dimension_numbers=(((1,), (1,)), ((), ())),
        preferred_element_type=jnp.float32,
    )

    @pl.when(k == pl.num_programs(1) - 1)
    def _():
        out = jnp.dot(
            h_acc[...].astype(wu_t_ref.dtype), wu_t_ref[...],
            preferred_element_type=jnp.float32,
        )
        o_ref[...] = out.astype(o_ref.dtype)


def lora_linear_forward(x, wd, wu, *, multiplier=1.0, alpha=None,
                        compute_dtype=None, out_dtype=None, tm=None, tk=None):
    """Pallas implementation of LoRAModule.forward for a Linear org_module.

    x:  (..., in_dim)
    wd: (lora_dim, in_dim)   -- nn.Linear(in_dim, lora_dim).weight
    wu: (out_dim, lora_dim)  -- nn.Linear(lora_dim, out_dim).weight
    compute_dtype: optional dtype (e.g. bf16) for the weights / MXU inputs;
                   x stays in its HBM dtype and is cast per-tile in-kernel.
    out_dtype:     optional output dtype override (default: x.dtype).
    """
    lora_dim, in_dim = wd.shape
    out_dim, lora_dim2 = wu.shape
    assert lora_dim == lora_dim2, "wd/wu rank mismatch"

    # PyTorch semantics: alpha == 0 or None -> alpha = lora_dim (scale = 1).
    if alpha is None or float(alpha) == 0.0:
        alpha = float(lora_dim)
    scale = float(alpha) / float(lora_dim)
    gain = float(multiplier) * scale

    lead_shape = x.shape[:-1]
    M = int(math.prod(lead_shape)) if lead_shape else 1
    out_dtype = x.dtype if out_dtype is None else jnp.dtype(out_dtype)
    x2d = x.reshape(M, in_dim)  # no dtype cast, no padding: keep HBM traffic minimal

    weight_dtype = jnp.dtype(compute_dtype) if compute_dtype is not None else jnp.dtype(wd.dtype)
    # Fold gain into the tiny (r, out_dim) lora_up weight (lane-dense orientation).
    wu_t = (wu.T.astype(jnp.float32) * gain).astype(weight_dtype)
    wd_c = wd.astype(weight_dtype)

    x_itemsize = jnp.dtype(x2d.dtype).itemsize
    w_itemsize = weight_dtype.itemsize
    out_itemsize = jnp.dtype(out_dtype).itemsize

    # VMEM budgeting: keep the picker consistent with the scoped limit and
    # v7x-safe (64 MiB per TC -> limit 48 MiB; v5e/v6e 128 MiB -> limit 96 MiB).
    vmem_capacity = _vmem_capacity_bytes()
    vmem_limit = int(min(vmem_capacity * 3 // 4, 96 * (1 << 20)))
    budget = max(vmem_limit - 12 * (1 << 20), 8 * (1 << 20))

    # K (in_dim) tiling: only when a full-in_dim x block would force tm below
    # ~256 rows (big hidden sizes on 64 MiB-per-TC v7x). tk must divide in_dim.
    if tk is None:
        tk = in_dim
        if in_dim % 128 == 0:
            for cand in (in_dim, 8192, 4096, 2048, 1024, 512, 256, 128):
                if in_dim % cand == 0 and 2 * 256 * cand * x_itemsize <= budget // 3:
                    tk = cand
                    break
    assert in_dim % tk == 0, "tk must divide in_dim"
    assert tk == in_dim or tk % 128 == 0, "tk must be a multiple of 128 (or == in_dim)"
    grid_k = in_dim // tk

    # Row alignment: sub-32-bit tiles pack 16 (bf16) / 32 (int8) rows per vreg.
    min_itemsize = min(x_itemsize, out_itemsize, w_itemsize)
    row_align = {4: 8, 2: 16, 1: 32}.get(min_itemsize, 8)

    if tm is None:
        tm_max = _pick_tm_max(tk, out_dim, lora_dim, x_itemsize, w_itemsize,
                              out_itemsize, budget)
        tm_max = max(tm_max, row_align)
        # Balanced tile: near-zero tail waste, and >= num_tensorcores blocks so
        # both TensorCores work on v7x (no effect on v5e/v6e).
        max_blocks = max(1, pl.cdiv(M, row_align))
        n_blocks = max(pl.cdiv(M, tm_max), min(_num_tensorcores(), max_blocks))
        tm = _round_up(pl.cdiv(M, n_blocks), row_align)
    else:
        tm = _round_up(int(tm), row_align)
    grid_m = pl.cdiv(M, tm)

    cost = pl.CostEstimate(
        flops=2 * M * lora_dim * (in_dim + out_dim),
        transcendentals=0,
        bytes_accessed=(x2d.size * x_itemsize
                        + wd_c.size * w_itemsize
                        + wu_t.size * w_itemsize
                        + M * out_dim * out_itemsize),
    )

    out2d = pl.pallas_call(
        _lora_kernel,
        out_shape=jax.ShapeDtypeStruct((M, out_dim), out_dtype),
        grid_spec=pltpu.PrefetchScalarGridSpec(
            num_scalar_prefetch=0,
            grid=(grid_m, grid_k),
            in_specs=[
                pl.BlockSpec((tm, tk), lambda i, k: (i, k)),
                pl.BlockSpec((lora_dim, tk), lambda i, k: (0, k)),
                pl.BlockSpec((lora_dim, out_dim), lambda i, k: (0, 0)),
            ],
            out_specs=pl.BlockSpec((tm, out_dim), lambda i, k: (i, 0)),
            scratch_shapes=[pltpu.VMEM((tm, lora_dim), jnp.float32)],
        ),
        compiler_params=pltpu.CompilerParams(
            dimension_semantics=("parallel", "arbitrary"),
            vmem_limit_bytes=vmem_limit,
        ),
        cost_estimate=cost,
    )(x2d, wd_c, wu_t)

    return out2d.reshape(*lead_shape, out_dim)


if __name__ == "__main__":
    # Small Linear-LoRA shapes: batch=2, seq=64, hidden=128 (full 128-lane
    # tiles so the demo reflects production layout), lora rank 4.
    batch, seq, in_dim, out_dim, lora_dim = 2, 64, 128, 128, 4
    multiplier, alpha = 1.0, 1.0

    key = jax.random.PRNGKey(0)
    kx, kd, ku, kx3, kd3 = jax.random.split(key, 5)

    x = jax.random.normal(kx, (batch, seq, in_dim), dtype=jnp.float32)

    # Deterministic parameter init.
    # lora_down: kaiming_uniform_(a=sqrt(5)) -> U(-b, b), b = sqrt(6/((1+5)*fan_in))
    bound = math.sqrt(6.0 / ((1.0 + 5.0) * in_dim))
    wd = jax.random.uniform(kd, (lora_dim, in_dim), jnp.float32, -bound, bound)
    # PyTorch inits lora_up to zeros (output identically zero); use small
    # deterministic non-zero weights to exercise the kernel numerically.
    wu = 0.02 * jax.random.normal(ku, (out_dim, lora_dim), dtype=jnp.float32)

    scale = alpha / lora_dim

    # 1) f32 path, exact-ish check vs pure-JAX reference.
    out = lora_linear_forward(x, wd, wu, multiplier=multiplier, alpha=alpha)
    out = jax.block_until_ready(out)
    ref = (x @ wd.T @ wu.T) * multiplier * scale
    assert out.shape == (batch, seq, out_dim)
    assert jnp.allclose(out, ref, atol=1e-5, rtol=1e-5), "mismatch vs reference"

    # 2) bf16 compute + bf16 output + non-tile-multiple M (ragged last block,
    #    no wrapper-side padding or boundary cast of x).
    x2 = x[:, :37]  # M = 74 rows
    out_bf16 = lora_linear_forward(
        x2, wd, wu, multiplier=multiplier, alpha=alpha,
        compute_dtype=jnp.bfloat16, out_dtype=jnp.bfloat16)
    out_bf16 = jax.block_until_ready(out_bf16)
    ref2 = (x2 @ wd.T @ wu.T) * multiplier * scale
    assert out_bf16.shape == ref2.shape
    max_err = float(jnp.max(jnp.abs(out_bf16.astype(jnp.float32) - ref2)))
    assert max_err <= 0.05 * float(jnp.max(jnp.abs(ref2))) + 1e-6, \
        "bf16 path mismatch vs reference"

    # 3) K-tiled path (grid_k = 2): in_dim=256 split into tk=128 chunks with the
    #    (tm, r) f32 scratch accumulator.
    in_dim3 = 256
    x3 = jax.random.normal(kx3, (2, 16, in_dim3), dtype=jnp.float32)
    bound3 = math.sqrt(6.0 / ((1.0 + 5.0) * in_dim3))
    wd3 = jax.random.uniform(kd3, (lora_dim, in_dim3), jnp.float32, -bound3, bound3)
    out3 = lora_linear_forward(x3, wd3, wu, multiplier=0.75, alpha=2.0, tk=128)
    out3 = jax.block_until_ready(out3)
    ref3 = (x3 @ wd3.T @ wu.T) * 0.75 * (2.0 / lora_dim)
    assert out3.shape == ref3.shape
    assert jnp.allclose(out3, ref3, atol=1e-5, rtol=1e-5), "K-tiled path mismatch"

    print("KERNEL_OK")
</pallas_src>

<mosaic_0001>
module attributes {stable_mosaic.version = 11 : i64} {
  func.func @_lora_kernel(%arg0: i32, %arg1: i32, %arg2: memref<128x128xf32, #tpu.memory_space<vmem>>, %arg3: memref<4x128xf32, #tpu.memory_space<vmem>>, %arg4: memref<4x128xf32, #tpu.memory_space<vmem>>, %arg5: memref<128x128xf32, #tpu.memory_space<vmem>>, %arg6: memref<128x4xf32, #tpu.memory_space<vmem>>) attributes {dimension_semantics = [#tpu.dimension_semantics<parallel>, #tpu.dimension_semantics<arbitrary>], iteration_bounds = array<i64: 1, 1>, scalar_prefetch = 0 : i64, scratch_operands = 1 : i64, tpu.core_type = #tpu.core_type<tc>, window_params = [{transform_indices = @transform_0, window_bounds = array<i64: 128, 128>}, {transform_indices = @transform_1, window_bounds = array<i64: 4, 128>}, {pipeline_mode = #tpu.pipeline_mode<synchronous>, transform_indices = @transform_2, window_bounds = array<i64: 4, 128>}, {transform_indices = @transform_3, window_bounds = array<i64: 128, 128>}]} {
    %c0_i32 = arith.constant 0 : i32
    %0 = arith.cmpi eq, %arg1, %c0_i32 : i32
    %1 = arith.extui %0 : i1 to i32
    %c0_i32_0 = arith.constant 0 : i32
    %2 = arith.cmpi ne, %1, %c0_i32_0 : i32
    scf.if %2 {
      %cst_10 = arith.constant 0.000000e+00 : f32
      %12 = vector.broadcast %cst_10 : f32 to vector<128x4xf32>
      %c0_11 = arith.constant 0 : index
      %c0_12 = arith.constant 0 : index
      %13 = vector.load %arg6[%c0_11, %c0_12] : memref<128x4xf32, #tpu.memory_space<vmem>>, vector<128x4xf32>
      tpu.vector_store %arg6[%c0_11, %c0_12], %12 {strides = array<i32>} : memref<128x4xf32, #tpu.memory_space<vmem>>, vector<128x4xf32>,
    } else {
    }
    %c0 = arith.constant 0 : index
    %c0_1 = arith.constant 0 : index
    %3 = vector.load %arg2[%c0, %c0_1] : memref<128x128xf32, #tpu.memory_space<vmem>>, vector<128x128xf32>
    %c0_2 = arith.constant 0 : index
    %c0_3 = arith.constant 0 : index
    %4 = vector.load %arg6[%c0_2, %c0_3] : memref<128x4xf32, #tpu.memory_space<vmem>>, vector<128x4xf32>
    %c0_4 = arith.constant 0 : index
    %c0_5 = arith.constant 0 : index
    %5 = vector.load %arg3[%c0_4, %c0_5] : memref<4x128xf32, #tpu.memory_space<vmem>>, vector<4x128xf32>
    %cst = arith.constant dense<0.000000e+00> : vector<128x4xf32>
    %6 = tpu.matmul %3, %5, %cst {dimension_numbers = #tpu.dot_dimension_numbers<[1], [1], [0], [0], [0, 0, 1, 0], [], []>} : vector<128x128xf32>, vector<4x128xf32>, vector<128x4xf32> -> vector<128x4xf32>
    %7 = arith.addf %4, %6 : vector<128x4xf32>
    %c0_6 = arith.constant 0 : index
    %c0_7 = arith.constant 0 : index
    %8 = vector.load %arg6[%c0_6, %c0_7] : memref<128x4xf32, #tpu.memory_space<vmem>>, vector<128x4xf32>
    tpu.vector_store %arg6[%c0_6, %c0_7], %7 {strides = array<i32>} : memref<128x4xf32, #tpu.memory_space<vmem>>, vector<128x4xf32>,
    %c0_i32_8 = arith.constant 0 : i32
    %9 = arith.cmpi eq, %arg1, %c0_i32_8 : i32
    %10 = arith.extui %9 : i1 to i32
    %c0_i32_9 = arith.constant 0 : i32
    %11 = arith.cmpi ne, %10, %c0_i32_9 : i32
    scf.if %11 {
      %c0_10 = arith.constant 0 : index
      %c0_11 = arith.constant 0 : index
      %12 = vector.load %arg6[%c0_10, %c0_11] : memref<128x4xf32, #tpu.memory_space<vmem>>, vector<128x4xf32>
      %c0_12 = arith.constant 0 : index
      %c0_13 = arith.constant 0 : index
      %13 = vector.load %arg4[%c0_12, %c0_13] : memref<4x128xf32, #tpu.memory_space<vmem>>, vector<4x128xf32>
      %cst_14 = arith.constant dense<0.000000e+00> : vector<128x128xf32>
      %14 = tpu.matmul %12, %13, %cst_14 {dimension_numbers = #tpu.dot_dimension_numbers<[1], [0], [0], [1], [0, 0, 1, 1], [], []>} : vector<128x4xf32>, vector<4x128xf32>, vector<128x128xf32> -> vector<128x128xf32>
      %c0_15 = arith.constant 0 : index
      %c0_16 = arith.constant 0 : index
      %15 = vector.load %arg5[%c0_15, %c0_16] : memref<128x128xf32, #tpu.memory_space<vmem>>, vector<128x128xf32>
      tpu.vector_store %arg5[%c0_15, %c0_16], %14 {strides = array<i32>} : memref<128x128xf32, #tpu.memory_space<vmem>>, vector<128x128xf32>,
    } else {
    }
    return
  }
  func.func @transform_0(%arg0: i32, %arg1: i32) -> (i32, i32) {
    %c0_i32 = arith.constant 0 : i32
    return %arg0, %arg1 : i32, i32
  }
  func.func @transform_1(%arg0: i32, %arg1: i32) -> (i32, i32) {
    %c0_i32 = arith.constant 0 : i32
    %c0_i32_0 = arith.constant 0 : i32
    return %c0_i32, %arg1 : i32, i32
  }
  func.func @transform_2(%arg0: i32, %arg1: i32) -> (i32, i32) {
    %c0_i32 = arith.constant 0 : i32
    %c0_i32_0 = arith.constant 0 : i32
    %c0_i32_1 = arith.constant 0 : i32
    return %c0_i32, %c0_i32_0 : i32, i32
  }
  func.func @transform_3(%arg0: i32, %arg1: i32) -> (i32, i32) {
    %c0_i32 = arith.constant 0 : i32
    %c0_i32_0 = arith.constant 0 : i32
    return %arg0, %c0_i32 : i32, i32
  }
}

</mosaic_0001>

<bundles_post_ra>
// kernel: tpu_custom_call.1
= control target key start
LH: loop header
LB: loop body
LE: loop exit
PB: predicated region body
PF: predicated region fallthrough
CT: control target
= control target key end

     0   :  { %8 = vsyncpa [#allocation4], 0  ;;  %s824_s0 = inlined_call_operand.hbm [shape: f32[128,128], index: 0, kind: input, shape index: {}]   ;;  %s825_s1 = inlined_call_operand.hbm [shape: f32[4,128], index: 1, kind: input, shape index: {}]   ;;  %s826_s2 = inlined_call_operand.hbm [shape: f32[4,128], index: 2, kind: input, shape index: {}]   ;;  %s827_s3 = inlined_call_operand.hbm [shape: f32[128,128], index: 3, kind: output, shape index: {}]  }
   0x1   :  { %9 = vsyncpa [#allocation7], 0 }
   0x2   :  { %10 = vsyncpa [#allocation5], 0  ;;  %s731_s12 = smov [#allocation6]   ;;  %s732_s14 = smov [#allocation3]  }
   0x3   :  { %s29_s13 = sshll.u32 %s731_s12, 4  ;;  %s16_s15 = sshll.u32 %s732_s14, 4  ;;  %s30_s13 = int_to_ptr.vmem [resolvable:$true] %s29_s13  ;;  %s17_s15 = int_to_ptr.vmem [resolvable:$true] %s16_s15 }
   0x4   :  { %s653_s16 = scalar_lea.vmem %s30_s13, 64  ;;  %p658_p1 = scmp.lt.s32.totalorder %s30_s13, %s30_s13 }
   0x5   :  { %p654_p0 = scmp.ne.s32.totalorder %s30_s13, %s653_s16  ;;  %p659_p2 = scmp.lt.s32.totalorder %s653_s16, %s653_s16 }
   0x7   :  { %p660_p3 = por %p659_p2, %p658_p1 }
   0x9   :  { %p661_p4 = pnand %p660_p3, %p654_p0 }
   0xb   :  { %664 = shalt.err (!%p661_p4)
}
   0xc   :  { %32 = dma.hbm_to_vmem [thread:$0]  %s825_s1, 64, %s30_s13, [#allocation7]  }
   0xd   :  { %s673_s19 = scalar_lea.vmem %s17_s15, 2048  ;;  %p678_p6 = scmp.lt.s32.totalorder %s17_s15, %s17_s15 }
   0xe   :  { %p674_p5 = scmp.ne.s32.totalorder %s17_s15, %s673_s19  ;;  %p679_p7 = scmp.lt.s32.totalorder %s673_s19, %s673_s19 }
  0x10   :  { %p680_p8 = por %p679_p7, %p678_p6 }
  0x12   :  { %p681_p9 = pnand %p680_p8, %p674_p5 }
  0x14   :  { %684 = shalt.err (!%p681_p9)
}
  0x15   :  { %s733_s20 = smov 128   ;;  %s734_s21 = smov 8  }
  0x16   :  { %22 = dma.hbm_to_vmem [thread:$0]  %s824_s0, 2048, %s17_s15, [#allocation4], %s733_s20, %s733_s20, %s734_s21  }
  0x17   :  { %s735_s24 = smov [#allocation8]  }
  0x18   :  { %s39_s25 = sshll.u32 %s735_s24, 4  ;;  %s40_s25 = int_to_ptr.vmem [resolvable:$true] %s39_s25 }
  0x19   :  { %s693_s1 = scalar_lea.vmem %s40_s25, 64  ;;  %p698_p11 = scmp.lt.s32.totalorder %s40_s25, %s40_s25 }
  0x1a   :  { %p694_p10 = scmp.ne.s32.totalorder %s40_s25, %s693_s1  ;;  %p699_p12 = scmp.lt.s32.totalorder %s693_s1, %s693_s1 }
  0x1c   :  { %p700_p13 = por %p699_p12, %p698_p11 }
  0x1e   :  { %p701_p0 = pnand %p700_p13, %p694_p10 }
  0x20   :  { %704 = shalt.err (!%p701_p0)
}
  0x21   :  { %42 = dma.hbm_to_vmem [thread:$0]  %s826_s2, 64, %s40_s25, [#allocation7]  }
  0x22   :  { %725 = dma.done.wait [#allocation4], 2048  }
  0x23   :  { %726 = vsyncadd [#allocation4], 4294965248 }
  0x24   :  { %727 = dma.done.wait [#allocation7], 128  }
  0x25   :  { %728 = vsyncadd [#allocation7], 4294967168  ;;  %vm56_vm0 = vcmask 31744   ;;  %v736_v0 = vmov 0.0   ;;  %v105_v1 = vld [vmem:[#allocation6] sm:$0xf] }
  0x26   :  { %58 = vst.msk [vmem:[#allocation2 + $0x8] sm:$0xff] %vm56_vm0, %v736_v0  ;;  %57 = vst.msk [vmem:[#allocation2] sm:$0xff] %vm56_vm0, %v736_v0  ;;  %v73_v2 = vld [vmem:[#allocation3] sm:$0xff]  ;;  %586 = vmatprep.subr.mxu0 %v105_v1  ;;  %v74_v3 = vld [vmem:[#allocation3 + $0x8] sm:$0xff]  ;;  %vm352_vm1 = vcmask 1043456   ;;  %s737_s0 = smov [#allocation9]  }
  0x27   :  { %59 = vst.msk [vmem:[#allocation2 + $0x10] sm:$0xff] %vm56_vm0, %v736_v0  ;;  %60 = vst.msk [vmem:[#allocation2 + $0x18] sm:$0xff] %vm56_vm0, %v736_v0  ;;  %588 = vmatprep.mubr.f32.mxu0 %v73_v2  ;;  %587 = vmatpush3.xpose.msra.mxu0 %v105_v1  ;;  %v75_v4 = vld [vmem:[#allocation3 + $0x10] sm:$0xff]  ;;  %v76_v5 = vld [vmem:[#allocation3 + $0x18] sm:$0xff]  ;;  %s522_s2 = sshll.u32 %s737_s0, 4  ;;  %s523_s2 = int_to_ptr.vmem [resolvable:$true] %s522_s2 }
  0x28   :  { %61 = vst.msk [vmem:[#allocation2 + $0x20] sm:$0xff] %vm56_vm0, %v736_v0  ;;  %62 = vst.msk [vmem:[#allocation2 + $0x28] sm:$0xff] %vm56_vm0, %v736_v0  ;;  %v77_v6 = vld [vmem:[#allocation3 + $0x20] sm:$0xff]  ;;  %v78_v7 = vld [vmem:[#allocation3 + $0x28] sm:$0xff]  ;;  %s705_s28 = scalar_lea.vmem %s523_s2, 2048  ;;  %p710_p2 = scmp.lt.s32.totalorder %s523_s2, %s523_s2 }
  0x29   :  { %63 = vst.msk [vmem:[#allocation2 + $0x30] sm:$0xff] %vm56_vm0, %v736_v0  ;;  %64 = vst.msk [vmem:[#allocation2 + $0x38] sm:$0xff] %vm56_vm0, %v736_v0  ;;  %v79_v8 = vld [vmem:[#allocation3 + $0x30] sm:$0xff]  ;;  %v80_v9 = vld [vmem:[#allocation3 + $0x38] sm:$0xff]  ;;  %p706_p1 = scmp.ne.s32.totalorder %s523_s2, %s705_s28  ;;  %p711_p3 = scmp.lt.s32.totalorder %s705_s28, %s705_s28 }
  0x2a   :  { %65 = vst.msk [vmem:[#allocation2 + $0x40] sm:$0xff] %vm56_vm0, %v736_v0  ;;  %66 = vst.msk [vmem:[#allocation2 + $0x48] sm:$0xff] %vm56_vm0, %v736_v0  ;;  %589 = vmatmul.mubr.f32.vlgmr.msra.gmra.mxu0 %v74_v3  ;;  %v81_v10 = vld [vmem:[#allocation3 + $0x40] sm:$0xff]  ;;  %v82_v11 = vld [vmem:[#allocation3 + $0x48] sm:$0xff] }
  0x2b   :  { %67 = vst.msk [vmem:[#allocation2 + $0x50] sm:$0xff] %vm56_vm0, %v736_v0  ;;  %68 = vst.msk [vmem:[#allocation2 + $0x58] sm:$0xff] %vm56_vm0, %v736_v0  ;;  %591 = vmatprep.mubr.f32.mxu0 %v75_v4  ;;  %v83_v12 = vld [vmem:[#allocation3 + $0x50] sm:$0xff]  ;;  %v84_v13 = vld [vmem:[#allocation3 + $0x58] sm:$0xff]  ;;  %p712_p4 = por %p711_p3, %p710_p2 }
  0x2c   :  { %69 = vst.msk [vmem:[#allocation2 + $0x60] sm:$0xff] %vm56_vm0, %v736_v0  ;;  %70 = vst.msk [vmem:[#allocation2 + $0x68] sm:$0xff] %vm56_vm0, %v736_v0  ;;  %v85_v14 = vld [vmem:[#allocation3 + $0x60] sm:$0xff]  ;;  %v86_v15 = vld [vmem:[#allocation3 + $0x68] sm:$0xff] }
  0x2d   :  { %71 = vst.msk [vmem:[#allocation2 + $0x70] sm:$0xff] %vm56_vm0, %v736_v0  ;;  %72 = vst.msk [vmem:[#allocation2 + $0x78] sm:$0xff] %vm56_vm0, %v736_v0  ;;  %v87_v16 = vld [vmem:[#allocation3 + $0x70] sm:$0xff]  ;;  %v88_v17 = vld [vmem:[#allocation3 + $0x78] sm:$0xff]  ;;  %p713_p5 = pnand %p712_p4, %p706_p1 }
  0x2e   :  { %592 = vmatmul.mubr.f32.gmra.mxu0 %v76_v5  ;;  %v303_v18 = vld [vmem:[#allocation8] sm:$0xf]  ;;  %v90_v19 = vld [vmem:[#allocation2 + $0x8] sm:$0xff]  ;;  %v92_v24 = vld [vmem:[#allocation2 + $0x18] sm:$0xff] }
  0x2f   :  { %594 = vmatprep.mubr.f32.mxu0 %v77_v6  ;;  %612 = vmatprep.subr.msk.mxu1 %vm352_vm1, %v303_v18  ;;  %v89_v21 = vld [vmem:[#allocation2] sm:$0xff]  ;;  %v91_v27 = vld [vmem:[#allocation2 + $0x10] sm:$0xff]  ;;  %v94_v30 = vld [vmem:[#allocation2 + $0x28] sm:$0xff] }
  0x30   :  { %613 = vmatpush3.msk.msra.mxu1 %vm352_vm1, %v303_v18  ;;  %v93_v33 = vld [vmem:[#allocation2 + $0x20] sm:$0xff]  ;;  %v96_v36 = vld [vmem:[#allocation2 + $0x38] sm:$0xff]  ;;  %v95_v40 = vld [vmem:[#allocation2 + $0x30] sm:$0xff] }
  0x31   :  { %v98_v44 = vld [vmem:[#allocation2 + $0x48] sm:$0xff]  ;;  %v97_v48 = vld [vmem:[#allocation2 + $0x40] sm:$0xff] }
  0x32   :  { %595 = vmatmul.mubr.f32.gmra.mxu0 %v78_v7  ;;  %v100_v52 = vld [vmem:[#allocation2 + $0x58] sm:$0xff]  ;;  %v99_v56 = vld [vmem:[#allocation2 + $0x50] sm:$0xff] }
  0x33   :  { %597 = vmatprep.mubr.f32.mxu0 %v79_v8  ;;  %v102_v60 = vld [vmem:[#allocation2 + $0x68] sm:$0xff]  ;;  %v101_v0 = vld [vmem:[#allocation2 + $0x60] sm:$0xff] }
  0x34   :  { %v104_v4 = vld [vmem:[#allocation2 + $0x78] sm:$0xff]  ;;  %v103_v8 = vld [vmem:[#allocation2 + $0x70] sm:$0xff] }
  0x36   :  { %598 = vmatmul.mubr.f32.gmra.mxu0 %v80_v9 }
  0x37   :  { %600 = vmatprep.mubr.f32.mxu0 %v81_v10 }
  0x3a   :  { %601 = vmatmul.mubr.f32.gmra.mxu0 %v82_v11 }
  0x3b   :  { %603 = vmatprep.mubr.f32.mxu0 %v83_v12 }
  0x3e   :  { %604 = vmatmul.mubr.f32.gmra.mxu0 %v84_v13 }
  0x3f   :  { %606 = vmatprep.mubr.f32.mxu0 %v85_v14 }
  0x42   :  { %607 = vmatmul.mubr.f32.gmra.mxu0 %v86_v15 }
  0x43   :  { %609 = vmatprep.mubr.f32.mxu0 %v87_v16 }
  0x46   :  { %610 = vmatmul.mubr.f32.gmra.mxu0 %v88_v17 }
  0xea   :  { %v590_v20 = vpop.f32.mrf.mxu0 }
  0xeb   :  { %v252_v22 = vadd.f32 %v590_v20, %v90_v19 }
  0xec   :  { %v172_v23 = vpop.f32.mrf.mxu0 }
  0xed   :  { %269 = vst.msk [vmem:[#allocation2 + $0x8] sm:$0xff] %vm56_vm0, %v252_v22  ;;  %v251_v25 = vadd.f32 %v172_v23, %v89_v21 }
  0xee   :  { %v593_v26 = vpop.f32.mrf.mxu0 }
  0xef   :  { %268 = vst.msk [vmem:[#allocation2] sm:$0xff] %vm56_vm0, %v251_v25  ;;  %v254_v28 = vadd.f32 %v593_v26, %v92_v24 }
  0xf0   :  { %v182_v29 = vpop.f32.mrf.mxu0 }
  0xf1   :  { %271 = vst.msk [vmem:[#allocation2 + $0x18] sm:$0xff] %vm56_vm0, %v254_v28  ;;  %v253_v31 = vadd.f32 %v182_v29, %v91_v27 }
  0xf2   :  { %v596_v32 = vpop.f32.mrf.mxu0 }
  0xf3   :  { %270 = vst.msk [vmem:[#allocation2 + $0x10] sm:$0xff] %vm56_vm0, %v253_v31  ;;  %v256_v34 = vadd.f32 %v596_v32, %v94_v30 }
  0xf4   :  { %v192_v35 = vpop.f32.mrf.mxu0  ;;  %v288_v42 = vld [vmem:[#allocation2 + $0x8] sm:$0xff] }
  0xf5   :  { %273 = vst.msk [vmem:[#allocation2 + $0x28] sm:$0xff] %vm56_vm0, %v256_v34  ;;  %v255_v37 = vadd.f32 %v192_v35, %v93_v33 }
  0xf6   :  { %v599_v38 = vpop.f32.mrf.mxu0  ;;  %v287_v39 = vld [vmem:[#allocation2] sm:$0xff] }
  0xf7   :  { %272 = vst.msk [vmem:[#allocation2 + $0x20] sm:$0xff] %vm56_vm0, %v255_v37  ;;  %v258_v41 = vadd.f32 %v599_v38, %v96_v36  ;;  %614 = vmatprep.mubr.msk.f32.mxu1 %vm56_vm0, %v287_v39 }
  0xf8   :  { %v202_v43 = vpop.f32.mrf.mxu0  ;;  %615 = vmatmul.mubr.msk.f32.vlgmr.msra.gmra.mxu1 %vm56_vm0, %v288_v42  ;;  %v290_v50 = vld [vmem:[#allocation2 + $0x18] sm:$0xff] }
  0xf9   :  { %275 = vst.msk [vmem:[#allocation2 + $0x38] sm:$0xff] %vm56_vm0, %v258_v41  ;;  %v257_v45 = vadd.f32 %v202_v43, %v95_v40 }
  0xfa   :  { %v602_v46 = vpop.f32.mrf.mxu0  ;;  %v289_v47 = vld [vmem:[#allocation2 + $0x10] sm:$0xff] }
  0xfb   :  { %274 = vst.msk [vmem:[#allocation2 + $0x30] sm:$0xff] %vm56_vm0, %v257_v45  ;;  %v260_v49 = vadd.f32 %v602_v46, %v98_v44  ;;  %617 = vmatprep.mubr.msk.f32.mxu1 %vm56_vm0, %v289_v47 }
  0xfc   :  { %v212_v51 = vpop.f32.mrf.mxu0  ;;  %618 = vmatmul.mubr.msk.f32.gmra.mxu1 %vm56_vm0, %v290_v50  ;;  %v292_v58 = vld [vmem:[#allocation2 + $0x28] sm:$0xff] }
  0xfd   :  { %277 = vst.msk [vmem:[#allocation2 + $0x48] sm:$0xff] %vm56_vm0, %v260_v49  ;;  %v259_v53 = vadd.f32 %v212_v51, %v97_v48 }
  0xfe   :  { %v605_v54 = vpop.f32.mrf.mxu0  ;;  %v291_v55 = vld [vmem:[#allocation2 + $0x20] sm:$0xff] }
  0xff   :  { %276 = vst.msk [vmem:[#allocation2 + $0x40] sm:$0xff] %vm56_vm0, %v259_v53  ;;  %v262_v57 = vadd.f32 %v605_v54, %v100_v52  ;;  %620 = vmatprep.mubr.msk.f32.mxu1 %vm56_vm0, %v291_v55 }
 0x100   :  { %v222_v59 = vpop.f32.mrf.mxu0  ;;  %621 = vmatmul.mubr.msk.f32.gmra.mxu1 %vm56_vm0, %v292_v58  ;;  %v294_v2 = vld [vmem:[#allocation2 + $0x38] sm:$0xff] }
 0x101   :  { %279 = vst.msk [vmem:[#allocation2 + $0x58] sm:$0xff] %vm56_vm0, %v262_v57  ;;  %v261_v61 = vadd.f32 %v222_v59, %v99_v56 }
 0x102   :  { %v608_v62 = vpop.f32.mrf.mxu0  ;;  %v293_v63 = vld [vmem:[#allocation2 + $0x30] sm:$0xff] }
 0x103   :  { %278 = vst.msk [vmem:[#allocation2 + $0x50] sm:$0xff] %vm56_vm0, %v261_v61  ;;  %v264_v1 = vadd.f32 %v608_v62, %v102_v60  ;;  %623 = vmatprep.mubr.msk.f32.mxu1 %vm56_vm0, %v293_v63 }
 0x104   :  { %v232_v3 = vpop.f32.mrf.mxu0  ;;  %624 = vmatmul.mubr.msk.f32.gmra.mxu1 %vm56_vm0, %v294_v2  ;;  %v296_v10 = vld [vmem:[#allocation2 + $0x48] sm:$0xff] }
 0x105   :  { %281 = vst.msk [vmem:[#allocation2 + $0x68] sm:$0xff] %vm56_vm0, %v264_v1  ;;  %v263_v5 = vadd.f32 %v232_v3, %v101_v0 }
 0x106   :  { %v611_v6 = vpop.f32.mrf.mxu0  ;;  %v295_v7 = vld [vmem:[#allocation2 + $0x40] sm:$0xff] }
 0x107   :  { %280 = vst.msk [vmem:[#allocation2 + $0x60] sm:$0xff] %vm56_vm0, %v263_v5  ;;  %v266_v9 = vadd.f32 %v611_v6, %v104_v4  ;;  %626 = vmatprep.mubr.msk.f32.mxu1 %vm56_vm0, %v295_v7 }
 0x108   :  { %v242_v11 = vpop.f32.mrf.mxu0  ;;  %627 = vmatmul.mubr.msk.f32.gmra.mxu1 %vm56_vm0, %v296_v10  ;;  %v298_v14 = vld [vmem:[#allocation2 + $0x58] sm:$0xff] }
 0x109   :  { %283 = vst.msk [vmem:[#allocation2 + $0x78] sm:$0xff] %vm56_vm0, %v266_v9  ;;  %v265_v12 = vadd.f32 %v242_v11, %v103_v8 }
 0x10a   :  { %v297_v13 = vld [vmem:[#allocation2 + $0x50] sm:$0xff] }
 0x10b   :  { %282 = vst.msk [vmem:[#allocation2 + $0x70] sm:$0xff] %vm56_vm0, %v265_v12  ;;  %629 = vmatprep.mubr.msk.f32.mxu1 %vm56_vm0, %v297_v13 }
 0x10c   :  { %630 = vmatmul.mubr.msk.f32.gmra.mxu1 %vm56_vm0, %v298_v14  ;;  %v300_v16 = vld [vmem:[#allocation2 + $0x68] sm:$0xff] }
 0x10e   :  { %v299_v15 = vld [vmem:[#allocation2 + $0x60] sm:$0xff] }
 0x10f   :  { %632 = vmatprep.mubr.msk.f32.mxu1 %vm56_vm0, %v299_v15 }
 0x110   :  { %633 = vmatmul.mubr.msk.f32.gmra.mxu1 %vm56_vm0, %v300_v16  ;;  %v302_v18 = vld [vmem:[#allocation2 + $0x78] sm:$0xff] }
 0x112   :  { %v301_v17 = vld [vmem:[#allocation2 + $0x70] sm:$0xff] }
 0x113   :  { %635 = vmatprep.mubr.msk.f32.mxu1 %vm56_vm0, %v301_v17 }
 0x114   :  { %636 = vmatmul.mubr.msk.f32.gmra.mxu1 %vm56_vm0, %v302_v18 }
 0x1b8   :  { %v616_v19 = vpop.f32.mrf.mxu1 }
 0x1b9   :  { %502 = vst [vmem:[#allocation9 + $0x8] sm:$0xff] %v616_v19 }
 0x1ba   :  { %v422_v20 = vpop.f32.mrf.mxu1 }
 0x1bb   :  { %501 = vst [vmem:[#allocation9] sm:$0xff] %v422_v20 }
 0x1bc   :  { %v619_v21 = vpop.f32.mrf.mxu1 }
 0x1bd   :  { %504 = vst [vmem:[#allocation9 + $0x18] sm:$0xff] %v619_v21 }
 0x1be   :  { %v432_v22 = vpop.f32.mrf.mxu1 }
 0x1bf   :  { %503 = vst [vmem:[#allocation9 + $0x10] sm:$0xff] %v432_v22 }
 0x1c0   :  { %v622_v23 = vpop.f32.mrf.mxu1 }
 0x1c1   :  { %506 = vst [vmem:[#allocation9 + $0x28] sm:$0xff] %v622_v23 }
 0x1c2   :  { %v442_v24 = vpop.f32.mrf.mxu1 }
 0x1c3   :  { %505 = vst [vmem:[#allocation9 + $0x20] sm:$0xff] %v442_v24 }
 0x1c4   :  { %v625_v25 = vpop.f32.mrf.mxu1 }
 0x1c5   :  { %508 = vst [vmem:[#allocation9 + $0x38] sm:$0xff] %v625_v25 }
 0x1c6   :  { %v452_v26 = vpop.f32.mrf.mxu1 }
 0x1c7   :  { %507 = vst [vmem:[#allocation9 + $0x30] sm:$0xff] %v452_v26 }
 0x1c8   :  { %v628_v27 = vpop.f32.mrf.mxu1 }
 0x1c9   :  { %510 = vst [vmem:[#allocation9 + $0x48] sm:$0xff] %v628_v27 }
 0x1ca   :  { %v462_v28 = vpop.f32.mrf.mxu1 }
 0x1cb   :  { %509 = vst [vmem:[#allocation9 + $0x40] sm:$0xff] %v462_v28 }
 0x1cc   :  { %v631_v29 = vpop.f32.mrf.mxu1 }
 0x1cd   :  { %512 = vst [vmem:[#allocation9 + $0x58] sm:$0xff] %v631_v29 }
 0x1ce   :  { %v472_v30 = vpop.f32.mrf.mxu1 }
 0x1cf   :  { %511 = vst [vmem:[#allocation9 + $0x50] sm:$0xff] %v472_v30 }
 0x1d0   :  { %v634_v31 = vpop.f32.mrf.mxu1 }
 0x1d1   :  { %514 = vst [vmem:[#allocation9 + $0x68] sm:$0xff] %v634_v31 }
 0x1d2   :  { %v482_v32 = vpop.f32.mrf.mxu1 }
 0x1d3   :  { %513 = vst [vmem:[#allocation9 + $0x60] sm:$0xff] %v482_v32 }
 0x1d4   :  { %v637_v33 = vpop.f32.mrf.mxu1 }
 0x1d5   :  { %516 = vst [vmem:[#allocation9 + $0x78] sm:$0xff] %v637_v33 }
 0x1d6   :  { %v492_v34 = vpop.f32.mrf.mxu1 }
 0x1d7   :  { %515 = vst [vmem:[#allocation9 + $0x70] sm:$0xff] %v492_v34 }
 0x1d8   :  { %716 = shalt.err (!%p713_p5)
}
 0x1d9   :  { %528 = dma.vmem_to_hbm [thread:$0]  %s523_s2, 2048, %s827_s3, [#allocation5], %s733_s20, %s733_s20, %s734_s21  }
 0x1da   :  { %729 = dma.done.wait [#allocation5], 2048  }
 0x1db   :  { %730 = vsyncadd [#allocation5], 4294965248 }
 0x1dc   :  { %532 = vsyncpa [#allocation4], 1 }
 0x1dd   :  { %533 = vsyncpa [#allocation7], 1 }
 0x1de   :  { %534 = vsyncpa [#allocation5], 1 }

</bundles_post_ra>
